<compile_context>
chip_gen: v5e
topology: v5e:2x2
jax: 0.10.0
libtpu: 0.0.40
codegen_flags: <defaults>
</compile_context>

<pallas_src>
import numpy as np
import jax
import jax.numpy as jnp
from jax.experimental import pallas as pl
from jax.experimental.pallas import tpu as pltpu


def merge_kernel(z_ref, zprev_ref, znext_ref, w1_ref, b1_ref, w2_ref, b2_ref, out_ref):
    f32 = jnp.float32
    lt = pl.program_id(1)
    n_lt = pl.num_programs(1)

    w1 = w1_ref[...]          # (2*Cin + 2*Cout, 2*Cout) bf16
    b1 = b1_ref[...]          # (1, 2*Cout) f32

    # ---- stage A: fused ConvTranspose1d (all 3 taps) + 1x1 Unet conv -> eo[j] = [e[j] | o[j]] ----
    # zin row j = [x[j+1] | x[j] | u[2j] | u[2j+1]]
    eo = jnp.dot(z_ref[0], w1, preferred_element_type=f32) + b1            # (TL, 2*Cout) f32

    # eo at the tile halo rows (j0-1 and jN+1), computed with the same fused weights.
    eo_hp = jnp.dot(zprev_ref[0], w1, preferred_element_type=f32) + b1     # (8, 2*Cout); row 7 = eo[j0-1]
    eo_hn = jnp.dot(znext_ref[0], w1, preferred_element_type=f32) + b1     # (8, 2*Cout); row 0 = eo[jN+1]
    # merged[-1] = 0 and merged[2L] = 0 are the zero padding of the k=3 merge conv.
    repl_prev = jnp.where(lt == 0, jnp.zeros_like(b1), eo_hp[7:8])
    repl_next = jnp.where(lt == n_lt - 1, jnp.zeros_like(b1), eo_hn[0:1])

    # ---- stage B: merge Conv1d(k=3, pad=1) on the interleaved sequence, one fused K-stacked dot ----
    eo_dn = jnp.concatenate([repl_prev, eo[:-1]], axis=0)                  # [e|o][j-1]
    eo_up = jnp.concatenate([eo[1:], repl_next], axis=0)                   # [e|o][j+1]
    z2 = jnp.concatenate([eo_dn, eo, eo_up], axis=-1).astype(jnp.bfloat16)  # (TL, 6*Cout)
    out = jnp.dot(z2, w2_ref[...], preferred_element_type=f32) + b2_ref[...]
    out_ref[0] = out.astype(out_ref.dtype)                                 # (TL, [out_even | out_odd])


def _pick_tile(l, tl_max):
    """Largest multiple-of-8 divisor of l that is <= tl_max (l must be a multiple of 8)."""
    best = 8
    for t in range(8, min(tl_max, l) + 1, 8):
        if l % t == 0:
            best = t
    return best


def merge_module_forward(params, origin_ncl, unet_ncl, *, tl_max=512):
    """origin_ncl: (N, Cin, L), unet_ncl: (N, Cout, 2L).  Returns (N, Cout, 2L) float32."""
    n, c_in, l_in = origin_ncl.shape
    c_out = params["wm"].shape[0]
    l_out = 2 * l_in  # (L-1)*2 - 2*1 + 3 + output_padding(=1)
    assert unet_ncl.shape == (n, c_out, l_out)
    assert l_in % 8 == 0, "this kernel assumes the input length is a multiple of 8"

    bf16 = jnp.bfloat16

    # ---- glue: NCL -> NLC and pack the kernel input rows [x[j+1] | x[j] | u[2j] | u[2j+1]] ----
    x = jnp.transpose(origin_ncl, (0, 2, 1)).astype(bf16)                          # (N, L, Cin)
    x_next = jnp.concatenate([x[:, 1:, :], jnp.zeros((n, 1, c_in), bf16)], axis=1)  # x[j+1], 0 past end
    u = jnp.transpose(unet_ncl, (0, 2, 1)).reshape(n, l_in, 2 * c_out).astype(bf16)  # [u_even | u_odd]
    zin = jnp.concatenate([x_next, x, u], axis=-1)                                  # (N, L, 2Cin+2Cout)

    # ---- glue: fuse the 3 conv weight sets into two K-stacked bf16 matrices + two biases ----
    wt0, wt1, wt2 = (params["wt"][:, :, k] for k in range(3))      # (Cin, Cout), ConvTranspose taps
    wuT = params["wu"][:, :, 0].T                                  # (Cout, Cout), 1x1 conv
    wm0T, wm1T, wm2T = (params["wm"][:, :, k].T for k in range(3))  # (Cout, Cout), merge conv taps
    zc = lambda r: jnp.zeros((r, c_out), jnp.float32)
    # w1 columns: [e | o];   rows: [x_next | x | u_even | u_odd]
    w1 = jnp.block([[zc(c_in),  wt0],
                    [wt1,       wt2],
                    [wuT,       zc(c_out)],
                    [zc(c_out), wuT]]).astype(bf16)                # (2Cin+2Cout, 2Cout)
    # w2 columns: [out_even | out_odd];  rows: [e_prev | o_prev | e | o | e_next | o_next]
    w2 = jnp.block([[zc(c_out), zc(c_out)],
                    [wm0T,      zc(c_out)],
                    [wm1T,      wm0T],
                    [wm2T,      wm1T],
                    [zc(c_out), wm2T],
                    [zc(c_out), zc(c_out)]]).astype(bf16)          # (6Cout, 2Cout)
    b1 = jnp.tile((params["bt"] + params["bu"]).reshape(1, c_out), (1, 2))  # (1, 2Cout) f32
    b2 = jnp.tile(params["bm"].reshape(1, c_out), (1, 2))                   # (1, 2Cout) f32

    # ---- L tiling ----
    tl = _pick_tile(l_in, tl_max)
    n_lt = l_in // tl
    bpt = tl // 8                 # 8-row blocks per L-tile (halo block granularity)
    n_lb = l_in // 8
    kin = 2 * c_in + 2 * c_out

    main = pl.BlockSpec((1, tl, kin), lambda b, t: (b, t, 0))
    # 8-row sublane-aligned halo blocks containing rows j0-1 (sublane 7) and jN+1 (sublane 0).
    # Block indices are clamped at the global boundaries; the kernel masks those rows to zero.
    halo_prev = pl.BlockSpec((1, 8, kin), lambda b, t: (b, jnp.maximum(t * bpt - 1, 0), 0))
    halo_next = pl.BlockSpec((1, 8, kin), lambda b, t: (b, jnp.minimum((t + 1) * bpt, n_lb - 1), 0))
    const = lambda a: pl.BlockSpec(a.shape, lambda b, t: (0,) * a.ndim)

    out_slab = pl.pallas_call(
        merge_kernel,
        grid=(n, n_lt),
        in_specs=[main, halo_prev, halo_next,
                  const(w1), const(b1), const(w2), const(b2)],
        out_specs=pl.BlockSpec((1, tl, 2 * c_out), lambda b, t: (b, t, 0)),
        out_shape=jax.ShapeDtypeStruct((n, l_in, 2 * c_out), jnp.float32),
        compiler_params=pltpu.CompilerParams(
            dimension_semantics=("parallel", "parallel")),
    )(zin, zin, zin, w1, b1, w2, b2)

    # ---- glue: (N, L, [out_even | out_odd]) -> (N, 2L, Cout) interleave is a pure reshape ----
    return jnp.transpose(out_slab.reshape(n, l_out, c_out), (0, 2, 1))


def init_params(key, in_dim, out_dim):
    ks = jax.random.split(key, 6)

    def u(k, shape, fan_in):
        bound = 1.0 / float(np.sqrt(fan_in))
        return jax.random.uniform(k, shape, jnp.float32, -bound, bound)

    return {
        # ConvTranspose1d weight: (in_dim, out_dim, 3)
        "wt": u(ks[0], (in_dim, out_dim, 3), in_dim * 3),
        "bt": u(ks[1], (out_dim,), in_dim * 3),
        # Conv1d 1x1 weight: (out_dim, out_dim, 1)
        "wu": u(ks[2], (out_dim, out_dim, 1), out_dim),
        "bu": u(ks[3], (out_dim,), out_dim),
        # Conv1d k=3 weight: (out_dim, out_dim, 3)
        "wm": u(ks[4], (out_dim, out_dim, 3), out_dim * 3),
        "bm": u(ks[5], (out_dim,), out_dim * 3),
    }


def reference_forward(p, origin, unet):
    """Pure numpy replica of the PyTorch MergeModule forward (NCL layout, f32)."""
    wt, bt = p["wt"], p["bt"]            # (Cin, Cout, 3), (Cout,)
    wu, bu = p["wu"], p["bu"]            # (Cout, Cout, 1), (Cout,)
    wm, bm = p["wm"], p["bm"]            # (Cout, Cout, 3), (Cout,)
    n, _, l_in = origin.shape
    c_out = wt.shape[1]
    l_out = 2 * l_in
    # ConvTranspose1d(k=3, stride=2, pad=1, output_pad=1)
    orig_out = np.zeros((n, c_out, l_out), np.float32) + bt[None, :, None]
    for i in range(l_in):
        for k in range(3):
            t = 2 * i - 1 + k
            if 0 <= t < l_out:
                orig_out[:, :, t] += np.einsum("nc,co->no", origin[:, :, i], wt[:, :, k])
    # Conv1d 1x1
    unet_out = np.einsum("ncl,oc->nol", unet, wu[:, :, 0]) + bu[None, :, None]
    merged = unet_out + orig_out
    # Conv1d k=3, pad=1
    mp = np.pad(merged, ((0, 0), (0, 0), (1, 1)))
    out = np.zeros((n, c_out, l_out), np.float32) + bm[None, :, None]
    for k in range(3):
        out += np.einsum("ncl,oc->nol", mp[:, :, k:k + l_out], wm[:, :, k])
    return out


if __name__ == "__main__":
    n, in_dim, out_dim, l_in = 2, 12, 16, 48
    l_out = 2 * l_in                       # output_padding = 1  =>  L_out = 2 * L_in

    key = jax.random.PRNGKey(0)
    k_p, k_x, k_u = jax.random.split(key, 3)
    params = init_params(k_p, in_dim, out_dim)
    origin = jax.random.normal(k_x, (n, in_dim, l_in), jnp.float32)
    unet = jax.random.normal(k_u, (n, out_dim, l_out), jnp.float32)

    # tl_max=16 forces 3 L-tiles so the halo / boundary-mask path is exercised.
    fwd = jax.jit(lambda p, o, u: merge_module_forward(p, o, u, tl_max=16))
    out = jax.block_until_ready(fwd(params, origin, unet))

    ref = reference_forward({k: np.asarray(v) for k, v in params.items()},
                            np.asarray(origin), np.asarray(unet))
    # bf16 matmul operands (f32 accumulation) -> looser tolerance than a pure-f32 kernel.
    np.testing.assert_allclose(np.asarray(out), ref, rtol=5e-2, atol=5e-2)
    print("KERNEL_OK")
</pallas_src>

<mosaic_0001>
module attributes {stable_mosaic.version = 11 : i64} {
  func.func @merge_kernel(%arg0: i32, %arg1: i32, %arg2: memref<1x16x56xbf16, #tpu.memory_space<vmem>>, %arg3: memref<1x8x56xbf16, #tpu.memory_space<vmem>>, %arg4: memref<1x8x56xbf16, #tpu.memory_space<vmem>>, %arg5: memref<56x32xbf16, #tpu.memory_space<vmem>>, %arg6: memref<1x32xf32, #tpu.memory_space<vmem>>, %arg7: memref<96x32xbf16, #tpu.memory_space<vmem>>, %arg8: memref<1x32xf32, #tpu.memory_space<vmem>>, %arg9: memref<1x16x32xf32, #tpu.memory_space<vmem>>) attributes {dimension_semantics = [#tpu.dimension_semantics<parallel>, #tpu.dimension_semantics<parallel>], iteration_bounds = array<i64: 2, 3>, scalar_prefetch = 0 : i64, scratch_operands = 0 : i64, tpu.core_type = #tpu.core_type<tc>, window_params = [{transform_indices = @transform_0, window_bounds = array<i64: 1, 16, 56>}, {transform_indices = @transform_1, window_bounds = array<i64: 1, 8, 56>}, {transform_indices = @transform_2, window_bounds = array<i64: 1, 8, 56>}, {pipeline_mode = #tpu.pipeline_mode<synchronous>, transform_indices = @transform_3, window_bounds = array<i64: 56, 32>}, {pipeline_mode = #tpu.pipeline_mode<synchronous>, transform_indices = @transform_4, window_bounds = array<i64: 1, 32>}, {pipeline_mode = #tpu.pipeline_mode<synchronous>, transform_indices = @transform_5, window_bounds = array<i64: 96, 32>}, {pipeline_mode = #tpu.pipeline_mode<synchronous>, transform_indices = @transform_6, window_bounds = array<i64: 1, 32>}, {transform_indices = @transform_7, window_bounds = array<i64: 1, 16, 32>}]} {
    %c0 = arith.constant 0 : index
    %c0_0 = arith.constant 0 : index
    %0 = vector.load %arg5[%c0, %c0_0] : memref<56x32xbf16, #tpu.memory_space<vmem>>, vector<56x32xbf16>
    %c0_1 = arith.constant 0 : index
    %c0_2 = arith.constant 0 : index
    %1 = vector.load %arg6[%c0_1, %c0_2] : memref<1x32xf32, #tpu.memory_space<vmem>>, vector<1x32xf32>
    %c0_3 = arith.constant 0 : index
    %c0_4 = arith.constant 0 : index
    %c0_5 = arith.constant 0 : index
    %2 = vector.load %arg2[%c0_3, %c0_4, %c0_5] : memref<1x16x56xbf16, #tpu.memory_space<vmem>>, vector<1x16x56xbf16>
    %3 = vector.shape_cast %2 : vector<1x16x56xbf16> to vector<16x56xbf16>
    %cst = arith.constant dense<0.000000e+00> : vector<16x32xf32>
    %4 = tpu.matmul %3, %0, %cst {dimension_numbers = #tpu.dot_dimension_numbers<[1], [0], [0], [1], [0, 0, 1, 1], [], []>} : vector<16x56xbf16>, vector<56x32xbf16>, vector<16x32xf32> -> vector<16x32xf32>
    %5 = vector.broadcast %1 : vector<1x32xf32> to vector<16x32xf32>
    %6 = arith.addf %4, %5 : vector<16x32xf32>
    %c0_6 = arith.constant 0 : index
    %c0_7 = arith.constant 0 : index
    %c0_8 = arith.constant 0 : index
    %7 = vector.load %arg3[%c0_6, %c0_7, %c0_8] : memref<1x8x56xbf16, #tpu.memory_space<vmem>>, vector<1x8x56xbf16>
    %8 = vector.shape_cast %7 : vector<1x8x56xbf16> to vector<8x56xbf16>
    %cst_9 = arith.constant dense<0.000000e+00> : vector<8x32xf32>
    %9 = tpu.matmul %8, %0, %cst_9 {dimension_numbers = #tpu.dot_dimension_numbers<[1], [0], [0], [1], [0, 0, 1, 1], [], []>} : vector<8x56xbf16>, vector<56x32xbf16>, vector<8x32xf32> -> vector<8x32xf32>
    %10 = vector.broadcast %1 : vector<1x32xf32> to vector<8x32xf32>
    %11 = arith.addf %9, %10 : vector<8x32xf32>
    %c0_10 = arith.constant 0 : index
    %c0_11 = arith.constant 0 : index
    %c0_12 = arith.constant 0 : index
    %12 = vector.load %arg4[%c0_10, %c0_11, %c0_12] : memref<1x8x56xbf16, #tpu.memory_space<vmem>>, vector<1x8x56xbf16>
    %13 = vector.shape_cast %12 : vector<1x8x56xbf16> to vector<8x56xbf16>
    %cst_13 = arith.constant dense<0.000000e+00> : vector<8x32xf32>
    %14 = tpu.matmul %13, %0, %cst_13 {dimension_numbers = #tpu.dot_dimension_numbers<[1], [0], [0], [1], [0, 0, 1, 1], [], []>} : vector<8x56xbf16>, vector<56x32xbf16>, vector<8x32xf32> -> vector<8x32xf32>
    %15 = vector.broadcast %1 : vector<1x32xf32> to vector<8x32xf32>
    %16 = arith.addf %14, %15 : vector<8x32xf32>
    %c0_i32 = arith.constant 0 : i32
    %17 = arith.cmpi eq, %arg1, %c0_i32 : i32
    %cst_14 = arith.constant 0.000000e+00 : f32
    %18 = vector.broadcast %cst_14 : f32 to vector<1x32xf32>
    %19 = vector.extract_strided_slice %11 {offsets = [7, 0], sizes = [1, 32], strides = [1, 1]} : vector<8x32xf32> to vector<1x32xf32>
    %20 = arith.select %17, %18, %19 : vector<1x32xf32>
    %c2_i32 = arith.constant 2 : i32
    %21 = arith.cmpi eq, %arg1, %c2_i32 : i32
    %cst_15 = arith.constant 0.000000e+00 : f32
    %22 = vector.broadcast %cst_15 : f32 to vector<1x32xf32>
    %23 = vector.extract_strided_slice %16 {offsets = [0, 0], sizes = [1, 32], strides = [1, 1]} : vector<8x32xf32> to vector<1x32xf32>
    %24 = arith.select %21, %22, %23 : vector<1x32xf32>
    %25 = vector.extract_strided_slice %6 {offsets = [0, 0], sizes = [15, 32], strides = [1, 1]} : vector<16x32xf32> to vector<15x32xf32>
    %26 = tpu.concatenate %20, %25 in 0 : vector<1x32xf32>, vector<15x32xf32> -> vector<16x32xf32>
    %27 = vector.extract_strided_slice %6 {offsets = [1, 0], sizes = [15, 32], strides = [1, 1]} : vector<16x32xf32> to vector<15x32xf32>
    %28 = tpu.concatenate %27, %24 in 0 : vector<15x32xf32>, vector<1x32xf32> -> vector<16x32xf32>
    %29 = tpu.concatenate %26, %6, %28 in 1 : vector<16x32xf32>, vector<16x32xf32>, vector<16x32xf32> -> vector<16x96xf32>
    %30 = arith.truncf %29 : vector<16x96xf32> to vector<16x96xbf16>
    %c0_16 = arith.constant 0 : index
    %c0_17 = arith.constant 0 : index
    %31 = vector.load %arg7[%c0_16, %c0_17] : memref<96x32xbf16, #tpu.memory_space<vmem>>, vector<96x32xbf16>
    %cst_18 = arith.constant dense<0.000000e+00> : vector<16x32xf32>
    %32 = tpu.matmul %30, %31, %cst_18 {dimension_numbers = #tpu.dot_dimension_numbers<[1], [0], [0], [1], [0, 0, 1, 1], [], []>} : vector<16x96xbf16>, vector<96x32xbf16>, vector<16x32xf32> -> vector<16x32xf32>
    %c0_19 = arith.constant 0 : index
    %c0_20 = arith.constant 0 : index
    %33 = vector.load %arg8[%c0_19, %c0_20] : memref<1x32xf32, #tpu.memory_space<vmem>>, vector<1x32xf32>
    %34 = vector.broadcast %33 : vector<1x32xf32> to vector<16x32xf32>
    %35 = arith.addf %32, %34 : vector<16x32xf32>
    %c0_21 = arith.constant 0 : index
    %c0_22 = arith.constant 0 : index
    %c0_23 = arith.constant 0 : index
    %36 = vector.load %arg9[%c0_21, %c0_22, %c0_23] : memref<1x16x32xf32, #tpu.memory_space<vmem>>, vector<1x16x32xf32>
    %37 = vector.shape_cast %36 : vector<1x16x32xf32> to vector<16x32xf32>
    %38 = vector.shape_cast %35 : vector<16x32xf32> to vector<1x16x32xf32>
    tpu.vector_store %arg9[%c0_21, %c0_22, %c0_23], %38 {strides = array<i32>} : memref<1x16x32xf32, #tpu.memory_space<vmem>>, vector<1x16x32xf32>,
    return
  }
  func.func @transform_0(%arg0: i32, %arg1: i32) -> (i32, i32, i32) {
    %c0_i32 = arith.constant 0 : i32
    %c0_i32_0 = arith.constant 0 : i32
    return %arg0, %arg1, %c0_i32 : i32, i32, i32
  }
  func.func @transform_1(%arg0: i32, %arg1: i32) -> (i32, i32, i32) {
    %c2_i32 = arith.constant 2 : i32
    %0 = arith.muli %arg1, %c2_i32 : i32
    %c1_i32 = arith.constant 1 : i32
    %1 = arith.subi %0, %c1_i32 : i32
    %c0_i32 = arith.constant 0 : i32
    %2 = arith.maxsi %1, %c0_i32 : i32
    %c0_i32_0 = arith.constant 0 : i32
    %c0_i32_1 = arith.constant 0 : i32
    return %arg0, %2, %c0_i32_0 : i32, i32, i32
  }
  func.func @transform_2(%arg0: i32, %arg1: i32) -> (i32, i32, i32) {
    %c1_i32 = arith.constant 1 : i32
    %0 = arith.addi %arg1, %c1_i32 : i32
    %c2_i32 = arith.constant 2 : i32
    %1 = arith.muli %0, %c2_i32 : i32
    %c5_i32 = arith.constant 5 : i32
    %2 = arith.minsi %1, %c5_i32 : i32
    %c0_i32 = arith.constant 0 : i32
    %c0_i32_0 = arith.constant 0 : i32
    return %arg0, %2, %c0_i32 : i32, i32, i32
  }
  func.func @transform_3(%arg0: i32, %arg1: i32) -> (i32, i32) {
    %c0_i32 = arith.constant 0 : i32
    %c0_i32_0 = arith.constant 0 : i32
    %c0_i32_1 = arith.constant 0 : i32
    return %c0_i32, %c0_i32_0 : i32, i32
  }
  func.func @transform_4(%arg0: i32, %arg1: i32) -> (i32, i32) {
    %c0_i32 = arith.constant 0 : i32
    %c0_i32_0 = arith.constant 0 : i32
    %c0_i32_1 = arith.constant 0 : i32
    return %c0_i32, %c0_i32_0 : i32, i32
  }
  func.func @transform_5(%arg0: i32, %arg1: i32) -> (i32, i32) {
    %c0_i32 = arith.constant 0 : i32
    %c0_i32_0 = arith.constant 0 : i32
    %c0_i32_1 = arith.constant 0 : i32
    return %c0_i32, %c0_i32_0 : i32, i32
  }
  func.func @transform_6(%arg0: i32, %arg1: i32) -> (i32, i32) {
    %c0_i32 = arith.constant 0 : i32
    %c0_i32_0 = arith.constant 0 : i32
    %c0_i32_1 = arith.constant 0 : i32
    return %c0_i32, %c0_i32_0 : i32, i32
  }
  func.func @transform_7(%arg0: i32, %arg1: i32) -> (i32, i32, i32) {
    %c0_i32 = arith.constant 0 : i32
    %c0_i32_0 = arith.constant 0 : i32
    return %arg0, %arg1, %c0_i32 : i32, i32, i32
  }
}

</mosaic_0001>

<bundles_post_ra>
// kernel: _lambda_.1
= control target key start
LH: loop header
LB: loop body
LE: loop exit
PB: predicated region body
PF: predicated region fallthrough
CT: control target
= control target key end

     0   :  { %s1010_s24 = smov 0   ;;  %s1012_s25 = smov 0   ;;  %s1126_s0 = inlined_call_operand.vmem [shape: bf16[2,48,56], index: 0, kind: input, shape index: {}, may-alias: {0,1,2}]   ;;  %s1127_s1 = inlined_call_operand.vmem [shape: bf16[2,48,56], index: 1, kind: input, shape index: {}, may-alias: {0,1,2}]   ;;  %s1128_s2 = inlined_call_operand.vmem [shape: bf16[2,48,56], index: 2, kind: input, shape index: {}, may-alias: {0,1,2}]   ;;  %s1129_s3 = inlined_call_operand.vmem [shape: bf16[56,32], index: 3, kind: input, shape index: {}]   ;;  %s1130_s4 = inlined_call_operand.vmem [shape: f32[1,32], index: 4, kind: input, shape index: {}]   ;;  %s1131_s5 = inlined_call_operand.vmem [shape: bf16[96,32], index: 5, kind: input, shape index: {}]   ;;  %s1132_s6 = inlined_call_operand.vmem [shape: f32[1,32], index: 6, kind: input, shape index: {}]   ;;  %s1133_s7 = inlined_call_operand.vmem [shape: f32[2,48,32], index: 7, kind: output, shape index: {}]  }
   0x1   :  { %s1014_s26 = smov 0   ;;  %s1016_s27 = smov 0  }
   0x2   :  { %s1018_s28 = smov 0  }
   0x3 LB: > { %s26_s29 = sadd.s32 1, %s958_s26  ;;  %s29_s30 = sadd.s32 1, %s962_s27  ;;  %s966_s28 = sphi %s1018_s28, %s17_s28   ;;  %s962_s27 = sphi %s1016_s27, %s1142_s27   ;;  %s958_s26 = sphi %s1014_s26, %s1141_s26   ;;  %s954_s25 = sphi %s1012_s25, %s1140_s25   ;;  %s950_s24 = sphi %s1010_s24, %s1139_s24  }
   0x4   : > { %p27_p0 = scmp.ge.s32.totalorder %s26_s29, 3  ;;  %p791_p1 = scmp.ge.s32.totalorder %s966_s28, 1 }
   0x5   : > { %p320_p2 = scmp.lt.s32.totalorder %s966_s28, 7 }
   0x6   : > { %s1144_s29 = smov (%p27_p0, %s26_s29), 0  ;;  %s1146_s30 = smov (!%p27_p0, %s29_s30), %s962_s27 }
   0x7   : > { %1134 = sst [smem:[#allocation2_spill]] %s1144_s29  ;;  %p321_p3 = pnand %p791_p1, %p320_p2 }
   0x8   : > { %p31_p4 = scmp.ge.s32.totalorder %s1146_s30, 2  ;;  %s792_s10 = sshll.u32 (!%p321_p3), %s950_s24, 1 }
   0x9   : > { %324 = sbr.rel (%p321_p3) target bundleno = 444 (0x1bc), region = 48  ;;  %p385_p5 = scmp.lt.s32.totalorder (!%p321_p3), %s954_s25, 1 }
   0xa   : > { %s1148_s30 = smov (%p31_p4, %s1146_s30), 0  ;;  %p387_p6 = scmp.lt.s32.totalorder (!%p321_p3), %s792_s10, 5 }
   0xb   : > { %1135 = sst [smem:[#allocation3_spill]] %s1148_s30  ;;  %s795_s11 = sadd.s32 (!%p321_p3), 4294967295, %s792_s10 }
   0xc   : > { %s862_s12 = sadd.s32 (!%p321_p3), 2, %s792_s10  ;;  %p396_p7 = scmp.gt.s32.totalorder (!%p321_p3), %s795_s11, 0 }
   0xd   : > { %p1051_p8 = scmp.lt.s32.totalorder (!%p321_p3), %s862_s12, 5  ;;  %p796_p9 = scmp.lt.s32.totalorder (!%p321_p3), %s795_s11, 5 }
   0xe   : > { %v443_v0 = vld [vmem:[%s1129_s3 + $0x18] sm:$0xf]  ;;  %vm480_vm0 = vcmask 1043456   ;;  %s1150_s25 = smov (!%p385_p5, %s954_s25), 1  ;;  %s1152_s10 = smov (!%p387_p6, %s792_s10), 5  ;;  %v865_v4 = vld [vmem:[%s1129_s3 + $0x10] sm:$0xff] }
   0xf   : > { %v468_v1 = vunpack.c.l.b16 %v443_v0  ;;  %s873_s13 = smul.u32 6, %s1150_s25  ;;  %v864_v5 = vld [vmem:[%s1129_s3 + $0x8] sm:$0xff]  ;;  %s1154_s11 = smov (!%p396_p7, %s795_s11), 0  ;;  %v863_v6 = vld [vmem:[%s1129_s3] sm:$0xff]  ;;  %vm476_vm1 = vcmask 457728   ;;  %v870_v12 = vld [vmem:[%s1131_s5 + $0x18] sm:$0xff] }
  0x10   : > { %s1156_s12 = smov (!%p1051_p8, %s862_s12), 5  ;;  %s1158_s11 = smov (!%p796_p9, %s1154_s11), 5  ;;  %v872_v10 = vld [vmem:[%s1131_s5 + $0x28] sm:$0xff]  ;;  %v871_v11 = vld [vmem:[%s1131_s5 + $0x20] sm:$0xff]  ;;  %vm547_vm3 = vcmask 1040384   ;;  %vm554_vm5 = vcmask 1046528  }
  0x11   : > { %v472_v2 = vpack.c.b16 %v468_v1, %v468_v1  ;;  %s1049_s16 = sadd.s32 %s873_s13, %s1152_s10  ;;  %s1160_s12 = smov (!%p1051_p8, %s1156_s12), 5  ;;  %641 = vmatpush.bf16.msra.mxu3 %v872_v10  ;;  %v926_v13 = vld [vmem:[%s1130_s4] ss:$0 sm:$0xff]  ;;  %v869_v40 = vld [vmem:[%s1131_s5 + $0x10] sm:$0xff]  ;;  %v868_v41 = vld [vmem:[%s1131_s5 + $0x8] sm:$0xff]  ;;  %vm576_vm6 = vcmask 261120  }
  0x12   : > { %s793_s18 = sshll.u32 %s1049_s16, 2  ;;  %s403_s9 = sadd.s32 %s873_s13, %s1158_s11  ;;  %v867_v42 = vld [vmem:[%s1131_s5] sm:$0xff]  ;;  %vm579_vm7 = vcmask 523264   ;;  %vm635_vm8 = vcmask 785408  }
  0x13   : > { %v482_v3 = vsel %vm480_vm0, %v472_v2, 0  ;;  %s392_s8 = scalar_lea.vmem %s1126_s0, %s793_s18  ;;  %s801_s10 = sshll.u32 %s403_s9, 2  ;;  %v927_v54 = vld [vmem:[%s1132_s6] ss:$0 sm:$0xff] }
  0x14   : > { %488 = vmatpush.bf16.msra.mxu0 %v482_v3  ;;  %506 = vmatpush.bf16.msra.mxu1 %v482_v3  ;;  %s419_s14 = sadd.s32 %s873_s13, %s1160_s12  ;;  %s405_s17 = scalar_lea.vmem %s1127_s1, %s801_s10  ;;  %v866_v7 = vld [vmem:[%s392_s8] sm:$0xff] }
  0x15   : > { %523 = vmatpush.bf16.msra.mxu2 %v482_v3  ;;  %s806_s20 = sshll.u32 %s419_s14, 2  ;;  %v498_v8 = vld [vmem:[%s405_s17] sm:$0xf]  ;;  %p532_p10 = scmp.eq.s32.totalorder %s950_s24, 0  ;;  %642 = vmatpush.bf16.msra.mxu3 %v871_v11 }
  0x16   : > { %s421_s21 = scalar_lea.vmem %s1128_s2, %s806_s20  ;;  %p537_p11 = scmp.eq.s32.totalorder %s950_s24, 2 }
  0x17   : > { %v515_v9 = vld [vmem:[%s421_s21] sm:$0xf]  ;;  %s533_s29 = scalar_select %p532_p10, 1, 0 }
  0x18   : > { %489 = vmatpush.bf16.msra.mxu0 %v865_v4  ;;  %507 = vmatpush.bf16.msra.mxu1 %v865_v4  ;;  %s538_s8 = scalar_select %p537_p11, 1, 0 }
  0x19   : > { %524 = vmatpush.bf16.msra.mxu2 %v865_v4  ;;  %v534_v14 = vstv %s533_s29  ;;  %643 = vmatpush.bf16.msra.mxu3 %v870_v12  ;;  %s968_s24 = smov 32   ;;  %s969_s9 = smov 64  }
  0x1a   : > { %vm535_vm2 = vcmp.eq.s32.totalorder %v534_v14, 1  ;;  %v539_v22 = vstv %s538_s8  ;;  %s808_s21 = sshll.u32 %s1049_s16, 3 }
  0x1b   : > { %vm540_vm4 = vcmp.eq.s32.totalorder %v539_v22, 1  ;;  %s434_s29 = scalar_lea.vmem %s1133_s7, %s808_s21 }
  0x1c   : > { %490 = vmatpush.bf16.msra.mxu0 %v864_v5  ;;  %508 = vmatpush.bf16.msra.mxu1 %v864_v5 }
  0x1d   : > { %525 = vmatpush.bf16.msra.mxu2 %v864_v5  ;;  %644 = vmatpush.bf16.msra.mxu3 %v869_v40 }
  0x20   : > { %491 = vmatpush.bf16.msra.mxu0 %v863_v6  ;;  %509 = vmatpush.bf16.msra.mxu1 %v863_v6 }
  0x21   : > { %526 = vmatpush.bf16.msra.mxu2 %v863_v6  ;;  %645 = vmatpush.bf16.msra.mxu3 %v868_v41 }
  0x23   : > { %825 = vmatmul.msk.bf16.vlgmr.msra.gmra.mxu0 %vm476_vm1, %v866_v7  ;;  %826 = vmatmul.msk.bf16.vlgmr.msra.gmra.mxu1 %vm476_vm1, %v498_v8 }
  0x24   : > { %827 = vmatmul.msk.bf16.vlgmr.msra.gmra.mxu2 %vm476_vm1, %v515_v9 }
  0x25   : > { %646 = vmatpush.bf16.msra.mxu3 %v867_v42 }
  0xa0   : > { %v493_v15 = vpop.f32.mrf.mxu0  ;;  %v511_v16 = vpop.f32.mrf.mxu1 }
  0xa1   : > { %v494_v17 = vadd.f32 %v926_v13, %v493_v15  ;;  %v512_v18 = vadd.f32 %v926_v13, %v511_v16 }
  0xa3   : > { %v548_v19 = vrot.slane %v494_v17, 7  ;;  %v536_v20 = vsel %vm535_vm2, 0.0, %v512_v18  ;;  %v555_v35 = vrot.slane %v494_v17, 1 }
  0xa4   : > { %v543_v21 = vrot.slane %v536_v20, 7 }
  0xa6   : > { %v553_v23 = vsel %vm547_vm3, %v543_v21, %v548_v19 }
  0xa7   : > { %v528_v24 = vpop.f32.mrf.mxu2 }
  0xa8   : > { %v529_v25 = vadd.f32 %v926_v13, %v528_v24  ;;  %v495_v26 = vpop.f32.mrf.mxu0  ;;  %v513_v27 = vpop.f32.mrf.mxu1 }
  0xa9   : > { %v496_v28 = vadd.f32 %v926_v13, %v495_v26 }
  0xaa   : > { %v541_v29 = vsel %vm540_vm4, 0.0, %v529_v25 }
  0xab   : > { %v549_v30 = vrot.slane %v496_v28, 7  ;;  %v916_v31 = vpack.i.bf16 %v496_v28, %v494_v17  ;;  %v560_v32 = vrot.slane %v541_v29, 1  ;;  %v556_v33 = vrot.slane %v496_v28, 1 }
  0xad   : > { %917 = vrot.lane.b32.xlu0 %v916_v31, %s968_s24  ;;  %v550_v34 = vsel %vm547_vm3, %v548_v19, %v549_v30  ;;  %v557_v37 = vsel %vm554_vm5, %v555_v35, %v556_v33  ;;  %v562_v38 = vsel %vm554_vm5, %v556_v33, %v560_v32 }
  0xae   : > { %v921_v39 = vpack.i.bf16 %v562_v38, %v557_v37 }
  0xaf   : > { %v530_v36 = vpop.f32.mrf.mxu2 }
  0xb5   : > { %922 = vrot.lane.b32.xlu0 %v921_v39, %s969_s9 }
 0x11f   : > { %v918_v43 = vpop.permute.xlu0 %917 }
 0x120   : > { %v920_v44 = vunpack.i.h.bf16 %v918_v43  ;;  %v919_v45 = vunpack.i.l.bf16 %v918_v43 }
 0x122   : > { %v577_v49 = vsel %vm576_vm6, %v553_v23, %v919_v45  ;;  %v578_v50 = vsel %vm576_vm6, %v550_v34, %v920_v44 }
 0x127   : > { %v923_v46 = vpop.permute.xlu0 %922 }
 0x128   : > { %v925_v47 = vunpack.i.h.bf16 %v923_v46  ;;  %v924_v48 = vunpack.i.l.bf16 %v923_v46 }
 0x12a   : > { %v580_v51 = vsel %vm579_vm7, %v577_v49, %v924_v48  ;;  %v581_v52 = vsel %vm579_vm7, %v578_v50, %v925_v47 }
 0x12b   : > { %v582_v53 = vpack.c.bf16 %v581_v52, %v580_v51 }
 0x12d   : > { %852 = vmatmul.msk.bf16.vlgmr.msra.gmra.mxu3 %vm635_vm8, %v582_v53 }
 0x1b0   : > { %v648_v55 = vpop.f32.mrf.mxu3 }
 0x1b1   : > { %v649_v56 = vadd.f32 %v927_v54, %v648_v55 }
 0x1b3   : > { %653 = vst.msk [vmem:[%s434_s29] sm:$0xff] %vm576_vm6, %v649_v56 }
 0x1b8   : > { %v650_v57 = vpop.f32.mrf.mxu3 }
 0x1b9   : > { %v651_v58 = vadd.f32 %v927_v54, %v650_v57 }
 0x1bb   : > { %654 = vst.msk [vmem:[%s434_s29 + $0x8] sm:$0xff] %vm576_vm6, %v651_v58 }
 0x1bc PF: > { %s17_s28 = sadd.s32 1, %s966_s28   ;;  %s1137_s16 = sld [smem:[#allocation2_spill]] }
 0x1bd   : > { %p14_p12 = scmp.ge.s32.totalorder %s17_s28, 8   ;;  %s1138_s30 = sld [smem:[#allocation3_spill]] }
 0x1be   : > { %s1139_s24 = smov %s958_s26  ;;  %s1140_s25 = smov %s962_s27 }
 0x1bf   :  { %16 = sbr.rel (!%p14_p12) target bundleno = 3 (0x3), region = 84 }
 0x1c2   : > { %s1141_s26 = smov %s1137_s16 }
 0x1c3   : > { %s1142_s27 = smov %s1138_s30 }

</bundles_post_ra>
